<compile_context>
chip_gen: v7x
topology: tpu7x:2x2x1
jax: 0.10.0
libtpu: 0.0.40
codegen_flags: <defaults>
</compile_context>

<pallas_src>
import jax
import jax.numpy as jnp
from jax import lax
from jax.experimental import pallas as pl
from jax.experimental.pallas import tpu as pltpu


def _make_basic_block_kernel(H, W, Cin, Cout):
    """Per-image kernel body; H, W, Cin, Cout are static Python ints."""
    HW = H * W

    def kernel(patch_ref, w1_ref, w2_ref, b1_ref, b2_ref, mask_ref, out_ref):
        # patch_ref block: (1, 9*Cin, HW) -- im2col'd padded input, lane = HW.
        patches = patch_ref[0]                                   # (9*Cin, HW)

        # ---- conv1 (+ folded bn1 scale): one MXU matmul, bias + ReLU on VPU.
        o1 = jnp.dot(w1_ref[...], patches,
                     preferred_element_type=jnp.float32)         # (Cout, HW)
        o1 = jnp.maximum(o1 + b1_ref[...], 0.0)

        # ---- conv2 (+ folded bn2 scale): o1 stays in vregs; each 3x3 tap is a
        # static lane-roll on the XLU + a boundary mask, then a small MXU
        # matmul accumulated in f32.
        acc = None
        for t in range(9):
            dh, dw = t // 3 - 1, t % 3 - 1
            d = dh * W + dw                  # flat (row-major) pixel offset
            if d == 0:
                col = o1                     # center tap: no shift, no mask
            else:
                # out[p] = o1[p + d] where in-bounds, 0 on the image border.
                col = pltpu.roll(o1, shift=(-d) % HW, axis=1) * mask_ref[t]
            term = jnp.dot(w2_ref[t], col, preferred_element_type=jnp.float32)
            acc = term if acc is None else acc + term

        # ---- bn2 bias + residual + ReLU, lane-dense store.
        # The residual (= unpadded x) is exactly the center-tap rows of the
        # im2col patches, so no separate residual input is needed.
        residual = patches[4 * Cin:5 * Cin, :]                   # (Cin, HW)
        out_ref[0] = jnp.maximum(acc + b2_ref[...] + residual, 0.0)

    return kernel


def basic_block_forward(x_nchw, params, eps=1e-5):
    """BasicBlock forward. Input/output are NCHW (PyTorch convention)."""
    x = x_nchw.astype(jnp.float32)               # (B, C, H, W) -- no transpose
    B, Cin, H, W = x.shape
    Cout = params["w1"].shape[-1]
    assert Cin == Cout, "downsample is None => inplanes must equal planes"
    HW = H * W

    # stride=1, dilation=1 -> padding = 1 for both convs.
    pad = 1
    xpad = jnp.pad(x, ((0, 0), (0, 0), (pad, pad), (pad, pad)))

    # im2col for conv1 (cheap XLA glue): (B, 9*Cin, H*W), tap-major rows.
    taps = [xpad[:, :, kh:kh + H, kw:kw + W].reshape(B, Cin, HW)
            for kh in range(3) for kw in range(3)]
    patches = jnp.concatenate(taps, axis=1)

    # Fold BN (inference mode): scale goes into the conv weights, bias stays.
    s1 = params["g1"] / jnp.sqrt(params["v1"] + eps)             # (Cout,)
    b1 = (params["beta1"] - params["m1"] * s1).reshape(Cout, 1)
    s2 = params["g2"] / jnp.sqrt(params["v2"] + eps)
    b2 = (params["beta2"] - params["m2"] * s2).reshape(Cout, 1)

    # conv1 weight: HWIO -> (Cout, 9*Cin); column order matches patches rows.
    w1cat = jnp.transpose(params["w1"].astype(jnp.float32),
                          (3, 0, 1, 2)).reshape(Cout, 9 * Cin)
    w1cat = w1cat * s1[:, None]
    # conv2 weight: HWIO -> (9, Cout, Cin) per-tap matmul weights.
    w2taps = jnp.transpose(params["w2"].astype(jnp.float32),
                           (0, 1, 3, 2)).reshape(9, Cout, Cout)
    w2taps = w2taps * s2[None, :, None]

    # Boundary masks for conv2's rolled taps: (9, 1, H*W), 1.0 inside image.
    ii = jnp.arange(H)[:, None]
    jj = jnp.arange(W)[None, :]
    masks = jnp.stack([
        ((ii + dh >= 0) & (ii + dh < H) & (jj + dw >= 0) & (jj + dw < W)
         ).astype(jnp.float32).reshape(1, HW)
        for dh in (-1, 0, 1) for dw in (-1, 0, 1)])

    kernel = _make_basic_block_kernel(H, W, Cin, Cout)

    out = pl.pallas_call(
        kernel,
        out_shape=jax.ShapeDtypeStruct((B, Cout, HW), jnp.float32),
        grid_spec=pltpu.PrefetchScalarGridSpec(
            num_scalar_prefetch=0,
            grid=(B,),
            in_specs=[
                pl.BlockSpec((1, 9 * Cin, HW), lambda b: (b, 0, 0)),
                pl.BlockSpec((Cout, 9 * Cin), lambda b: (0, 0)),
                pl.BlockSpec((9, Cout, Cout), lambda b: (0, 0, 0)),
                pl.BlockSpec((Cout, 1), lambda b: (0, 0)),
                pl.BlockSpec((Cout, 1), lambda b: (0, 0)),
                pl.BlockSpec((9, 1, HW), lambda b: (0, 0, 0)),
            ],
            out_specs=pl.BlockSpec((1, Cout, HW), lambda b: (b, 0, 0)),
        ),
        compiler_params=pltpu.CompilerParams(
            dimension_semantics=("parallel",)),
    )(patches, w1cat, w2taps, b1, b2, masks)

    return out.reshape(B, Cout, H, W)


def basic_block_reference(x_nchw, params, eps=1e-5):
    """Pure-JAX reference (lax conv) of the same forward pass."""
    x = jnp.transpose(x_nchw, (0, 2, 3, 1)).astype(jnp.float32)
    dn = ("NHWC", "HWIO", "NHWC")

    def bn(o, g, b, m, v):
        return (o - m) / jnp.sqrt(v + eps) * g + b

    o = lax.conv_general_dilated(x, params["w1"], (1, 1), ((1, 1), (1, 1)),
                                 dimension_numbers=dn)
    o = jnp.maximum(bn(o, params["g1"], params["beta1"],
                       params["m1"], params["v1"]), 0.0)
    o = lax.conv_general_dilated(o, params["w2"], (1, 1), ((1, 1), (1, 1)),
                                 dimension_numbers=dn)
    o = bn(o, params["g2"], params["beta2"], params["m2"], params["v2"])
    o = jnp.maximum(o + x, 0.0)
    return jnp.transpose(o, (0, 3, 1, 2))


def init_params(key, inplanes, planes):
    ks = jax.random.split(key, 10)
    p = {
        # conv weights in HWIO layout (3,3,Cin,Cout)
        "w1": 0.1 * jax.random.normal(ks[0], (3, 3, inplanes, planes),
                                      jnp.float32),
        "w2": 0.1 * jax.random.normal(ks[1], (3, 3, planes, planes),
                                      jnp.float32),
        # bn1
        "g1": 1.0 + 0.1 * jax.random.normal(ks[2], (planes,), jnp.float32),
        "beta1": 0.1 * jax.random.normal(ks[3], (planes,), jnp.float32),
        "m1": 0.1 * jax.random.normal(ks[4], (planes,), jnp.float32),
        "v1": jax.random.uniform(ks[5], (planes,), jnp.float32, 0.5, 1.5),
        # bn2
        "g2": 1.0 + 0.1 * jax.random.normal(ks[6], (planes,), jnp.float32),
        "beta2": 0.1 * jax.random.normal(ks[7], (planes,), jnp.float32),
        "m2": 0.1 * jax.random.normal(ks[8], (planes,), jnp.float32),
        "v2": jax.random.uniform(ks[9], (planes,), jnp.float32, 0.5, 1.5),
    }
    return p


if __name__ == "__main__":
    key = jax.random.PRNGKey(0)
    k_x, k_p = jax.random.split(key)

    B, C, H, W = 2, 4, 16, 16        # BasicBlock(inplanes=4, planes=4)
    x = jax.random.normal(k_x, (B, C, H, W), jnp.float32)
    params = init_params(k_p, inplanes=C, planes=C)

    out = basic_block_forward(x, params)
    out = jax.block_until_ready(out)

    ref = jax.block_until_ready(basic_block_reference(x, params))
    assert out.shape == (B, C, H, W)
    assert jnp.allclose(out, ref, rtol=1e-4, atol=1e-4), (
        float(jnp.max(jnp.abs(out - ref))))

    print("KERNEL_OK")
</pallas_src>

<mosaic_0001>
module attributes {stable_mosaic.version = 11 : i64} {
  func.func @kernel(%arg0: i32, %arg1: memref<1x36x256xf32, #tpu.memory_space<vmem>>, %arg2: memref<4x36xf32, #tpu.memory_space<vmem>>, %arg3: memref<9x4x4xf32, #tpu.memory_space<vmem>>, %arg4: memref<4x1xf32, #tpu.memory_space<vmem>>, %arg5: memref<4x1xf32, #tpu.memory_space<vmem>>, %arg6: memref<9x1x256xf32, #tpu.memory_space<vmem>>, %arg7: memref<1x4x256xf32, #tpu.memory_space<vmem>>) attributes {dimension_semantics = [#tpu.dimension_semantics<parallel>], iteration_bounds = array<i64: 2>, scalar_prefetch = 0 : i64, scratch_operands = 0 : i64, tpu.core_type = #tpu.core_type<tc>, window_params = [{transform_indices = @transform_0, window_bounds = array<i64: 1, 36, 256>}, {pipeline_mode = #tpu.pipeline_mode<synchronous>, transform_indices = @transform_1, window_bounds = array<i64: 4, 36>}, {pipeline_mode = #tpu.pipeline_mode<synchronous>, transform_indices = @transform_2, window_bounds = array<i64: 9, 4, 4>}, {pipeline_mode = #tpu.pipeline_mode<synchronous>, transform_indices = @transform_3, window_bounds = array<i64: 4, 1>}, {pipeline_mode = #tpu.pipeline_mode<synchronous>, transform_indices = @transform_4, window_bounds = array<i64: 4, 1>}, {pipeline_mode = #tpu.pipeline_mode<synchronous>, transform_indices = @transform_5, window_bounds = array<i64: 9, 1, 256>}, {transform_indices = @transform_6, window_bounds = array<i64: 1, 4, 256>}]} {
    %c0 = arith.constant 0 : index
    %c0_0 = arith.constant 0 : index
    %c0_1 = arith.constant 0 : index
    %0 = vector.load %arg1[%c0, %c0_0, %c0_1] : memref<1x36x256xf32, #tpu.memory_space<vmem>>, vector<1x36x256xf32>
    %1 = vector.shape_cast %0 : vector<1x36x256xf32> to vector<36x256xf32>
    %c0_2 = arith.constant 0 : index
    %c0_3 = arith.constant 0 : index
    %2 = vector.load %arg2[%c0_2, %c0_3] : memref<4x36xf32, #tpu.memory_space<vmem>>, vector<4x36xf32>
    %cst = arith.constant dense<0.000000e+00> : vector<4x256xf32>
    %3 = tpu.matmul %2, %1, %cst {dimension_numbers = #tpu.dot_dimension_numbers<[1], [0], [0], [1], [0, 0, 1, 1], [], []>} : vector<4x36xf32>, vector<36x256xf32>, vector<4x256xf32> -> vector<4x256xf32>
    %c0_4 = arith.constant 0 : index
    %c0_5 = arith.constant 0 : index
    %4 = vector.load %arg4[%c0_4, %c0_5] : memref<4x1xf32, #tpu.memory_space<vmem>>, vector<4x1xf32>
    %5 = vector.broadcast %4 : vector<4x1xf32> to vector<4x256xf32>
    %6 = arith.addf %3, %5 : vector<4x256xf32>
    %cst_6 = arith.constant 0.000000e+00 : f32
    %7 = vector.broadcast %cst_6 : f32 to vector<4x256xf32>
    %8 = arith.maximumf %6, %7 : vector<4x256xf32>
    %c17_i32 = arith.constant 17 : i32
    %9 = tpu.dynamic_rotate %8 by %c17_i32 dim 1 : vector<4x256xf32>, i32 -> vector<4x256xf32>
    %c0_7 = arith.constant 0 : index
    %c0_8 = arith.constant 0 : index
    %c0_9 = arith.constant 0 : index
    %10 = vector.load %arg6[%c0_7, %c0_8, %c0_9] : memref<9x1x256xf32, #tpu.memory_space<vmem>>, vector<1x1x256xf32>
    %11 = vector.shape_cast %10 : vector<1x1x256xf32> to vector<1x256xf32>
    %12 = vector.broadcast %11 : vector<1x256xf32> to vector<4x256xf32>
    %13 = arith.mulf %9, %12 : vector<4x256xf32>
    %c0_10 = arith.constant 0 : index
    %c0_11 = arith.constant 0 : index
    %c0_12 = arith.constant 0 : index
    %14 = vector.load %arg3[%c0_10, %c0_11, %c0_12] : memref<9x4x4xf32, #tpu.memory_space<vmem>>, vector<1x4x4xf32>
    %15 = vector.shape_cast %14 : vector<1x4x4xf32> to vector<4x4xf32>
    %cst_13 = arith.constant dense<0.000000e+00> : vector<4x256xf32>
    %16 = tpu.matmul %15, %13, %cst_13 {dimension_numbers = #tpu.dot_dimension_numbers<[1], [0], [0], [1], [0, 0, 1, 1], [], []>} : vector<4x4xf32>, vector<4x256xf32>, vector<4x256xf32> -> vector<4x256xf32>
    %c16_i32 = arith.constant 16 : i32
    %17 = tpu.dynamic_rotate %8 by %c16_i32 dim 1 : vector<4x256xf32>, i32 -> vector<4x256xf32>
    %c1 = arith.constant 1 : index
    %c0_14 = arith.constant 0 : index
    %c0_15 = arith.constant 0 : index
    %18 = vector.load %arg6[%c1, %c0_14, %c0_15] : memref<9x1x256xf32, #tpu.memory_space<vmem>>, vector<1x1x256xf32>
    %19 = vector.shape_cast %18 : vector<1x1x256xf32> to vector<1x256xf32>
    %20 = vector.broadcast %19 : vector<1x256xf32> to vector<4x256xf32>
    %21 = arith.mulf %17, %20 : vector<4x256xf32>
    %c1_16 = arith.constant 1 : index
    %c0_17 = arith.constant 0 : index
    %c0_18 = arith.constant 0 : index
    %22 = vector.load %arg3[%c1_16, %c0_17, %c0_18] : memref<9x4x4xf32, #tpu.memory_space<vmem>>, vector<1x4x4xf32>
    %23 = vector.shape_cast %22 : vector<1x4x4xf32> to vector<4x4xf32>
    %cst_19 = arith.constant dense<0.000000e+00> : vector<4x256xf32>
    %24 = tpu.matmul %23, %21, %cst_19 {dimension_numbers = #tpu.dot_dimension_numbers<[1], [0], [0], [1], [0, 0, 1, 1], [], []>} : vector<4x4xf32>, vector<4x256xf32>, vector<4x256xf32> -> vector<4x256xf32>
    %25 = arith.addf %16, %24 : vector<4x256xf32>
    %c15_i32 = arith.constant 15 : i32
    %26 = tpu.dynamic_rotate %8 by %c15_i32 dim 1 : vector<4x256xf32>, i32 -> vector<4x256xf32>
    %c2 = arith.constant 2 : index
    %c0_20 = arith.constant 0 : index
    %c0_21 = arith.constant 0 : index
    %27 = vector.load %arg6[%c2, %c0_20, %c0_21] : memref<9x1x256xf32, #tpu.memory_space<vmem>>, vector<1x1x256xf32>
    %28 = vector.shape_cast %27 : vector<1x1x256xf32> to vector<1x256xf32>
    %29 = vector.broadcast %28 : vector<1x256xf32> to vector<4x256xf32>
    %30 = arith.mulf %26, %29 : vector<4x256xf32>
    %c2_22 = arith.constant 2 : index
    %c0_23 = arith.constant 0 : index
    %c0_24 = arith.constant 0 : index
    %31 = vector.load %arg3[%c2_22, %c0_23, %c0_24] : memref<9x4x4xf32, #tpu.memory_space<vmem>>, vector<1x4x4xf32>
    %32 = vector.shape_cast %31 : vector<1x4x4xf32> to vector<4x4xf32>
    %cst_25 = arith.constant dense<0.000000e+00> : vector<4x256xf32>
    %33 = tpu.matmul %32, %30, %cst_25 {dimension_numbers = #tpu.dot_dimension_numbers<[1], [0], [0], [1], [0, 0, 1, 1], [], []>} : vector<4x4xf32>, vector<4x256xf32>, vector<4x256xf32> -> vector<4x256xf32>
    %34 = arith.addf %25, %33 : vector<4x256xf32>
    %c1_i32 = arith.constant 1 : i32
    %35 = tpu.dynamic_rotate %8 by %c1_i32 dim 1 : vector<4x256xf32>, i32 -> vector<4x256xf32>
    %c3 = arith.constant 3 : index
    %c0_26 = arith.constant 0 : index
    %c0_27 = arith.constant 0 : index
    %36 = vector.load %arg6[%c3, %c0_26, %c0_27] : memref<9x1x256xf32, #tpu.memory_space<vmem>>, vector<1x1x256xf32>
    %37 = vector.shape_cast %36 : vector<1x1x256xf32> to vector<1x256xf32>
    %38 = vector.broadcast %37 : vector<1x256xf32> to vector<4x256xf32>
    %39 = arith.mulf %35, %38 : vector<4x256xf32>
    %c3_28 = arith.constant 3 : index
    %c0_29 = arith.constant 0 : index
    %c0_30 = arith.constant 0 : index
    %40 = vector.load %arg3[%c3_28, %c0_29, %c0_30] : memref<9x4x4xf32, #tpu.memory_space<vmem>>, vector<1x4x4xf32>
    %41 = vector.shape_cast %40 : vector<1x4x4xf32> to vector<4x4xf32>
    %cst_31 = arith.constant dense<0.000000e+00> : vector<4x256xf32>
    %42 = tpu.matmul %41, %39, %cst_31 {dimension_numbers = #tpu.dot_dimension_numbers<[1], [0], [0], [1], [0, 0, 1, 1], [], []>} : vector<4x4xf32>, vector<4x256xf32>, vector<4x256xf32> -> vector<4x256xf32>
    %43 = arith.addf %34, %42 : vector<4x256xf32>
    %c4 = arith.constant 4 : index
    %c0_32 = arith.constant 0 : index
    %c0_33 = arith.constant 0 : index
    %44 = vector.load %arg3[%c4, %c0_32, %c0_33] : memref<9x4x4xf32, #tpu.memory_space<vmem>>, vector<1x4x4xf32>
    %45 = vector.shape_cast %44 : vector<1x4x4xf32> to vector<4x4xf32>
    %cst_34 = arith.constant dense<0.000000e+00> : vector<4x256xf32>
    %46 = tpu.matmul %45, %8, %cst_34 {dimension_numbers = #tpu.dot_dimension_numbers<[1], [0], [0], [1], [0, 0, 1, 1], [], []>} : vector<4x4xf32>, vector<4x256xf32>, vector<4x256xf32> -> vector<4x256xf32>
    %47 = arith.addf %43, %46 : vector<4x256xf32>
    %c255_i32 = arith.constant 255 : i32
    %48 = tpu.dynamic_rotate %8 by %c255_i32 dim 1 : vector<4x256xf32>, i32 -> vector<4x256xf32>
    %c5 = arith.constant 5 : index
    %c0_35 = arith.constant 0 : index
    %c0_36 = arith.constant 0 : index
    %49 = vector.load %arg6[%c5, %c0_35, %c0_36] : memref<9x1x256xf32, #tpu.memory_space<vmem>>, vector<1x1x256xf32>
    %50 = vector.shape_cast %49 : vector<1x1x256xf32> to vector<1x256xf32>
    %51 = vector.broadcast %50 : vector<1x256xf32> to vector<4x256xf32>
    %52 = arith.mulf %48, %51 : vector<4x256xf32>
    %c5_37 = arith.constant 5 : index
    %c0_38 = arith.constant 0 : index
    %c0_39 = arith.constant 0 : index
    %53 = vector.load %arg3[%c5_37, %c0_38, %c0_39] : memref<9x4x4xf32, #tpu.memory_space<vmem>>, vector<1x4x4xf32>
    %54 = vector.shape_cast %53 : vector<1x4x4xf32> to vector<4x4xf32>
    %cst_40 = arith.constant dense<0.000000e+00> : vector<4x256xf32>
    %55 = tpu.matmul %54, %52, %cst_40 {dimension_numbers = #tpu.dot_dimension_numbers<[1], [0], [0], [1], [0, 0, 1, 1], [], []>} : vector<4x4xf32>, vector<4x256xf32>, vector<4x256xf32> -> vector<4x256xf32>
    %56 = arith.addf %47, %55 : vector<4x256xf32>
    %c241_i32 = arith.constant 241 : i32
    %57 = tpu.dynamic_rotate %8 by %c241_i32 dim 1 : vector<4x256xf32>, i32 -> vector<4x256xf32>
    %c6 = arith.constant 6 : index
    %c0_41 = arith.constant 0 : index
    %c0_42 = arith.constant 0 : index
    %58 = vector.load %arg6[%c6, %c0_41, %c0_42] : memref<9x1x256xf32, #tpu.memory_space<vmem>>, vector<1x1x256xf32>
    %59 = vector.shape_cast %58 : vector<1x1x256xf32> to vector<1x256xf32>
    %60 = vector.broadcast %59 : vector<1x256xf32> to vector<4x256xf32>
    %61 = arith.mulf %57, %60 : vector<4x256xf32>
    %c6_43 = arith.constant 6 : index
    %c0_44 = arith.constant 0 : index
    %c0_45 = arith.constant 0 : index
    %62 = vector.load %arg3[%c6_43, %c0_44, %c0_45] : memref<9x4x4xf32, #tpu.memory_space<vmem>>, vector<1x4x4xf32>
    %63 = vector.shape_cast %62 : vector<1x4x4xf32> to vector<4x4xf32>
    %cst_46 = arith.constant dense<0.000000e+00> : vector<4x256xf32>
    %64 = tpu.matmul %63, %61, %cst_46 {dimension_numbers = #tpu.dot_dimension_numbers<[1], [0], [0], [1], [0, 0, 1, 1], [], []>} : vector<4x4xf32>, vector<4x256xf32>, vector<4x256xf32> -> vector<4x256xf32>
    %65 = arith.addf %56, %64 : vector<4x256xf32>
    %c240_i32 = arith.constant 240 : i32
    %66 = tpu.dynamic_rotate %8 by %c240_i32 dim 1 : vector<4x256xf32>, i32 -> vector<4x256xf32>
    %c7 = arith.constant 7 : index
    %c0_47 = arith.constant 0 : index
    %c0_48 = arith.constant 0 : index
    %67 = vector.load %arg6[%c7, %c0_47, %c0_48] : memref<9x1x256xf32, #tpu.memory_space<vmem>>, vector<1x1x256xf32>
    %68 = vector.shape_cast %67 : vector<1x1x256xf32> to vector<1x256xf32>
    %69 = vector.broadcast %68 : vector<1x256xf32> to vector<4x256xf32>
    %70 = arith.mulf %66, %69 : vector<4x256xf32>
    %c7_49 = arith.constant 7 : index
    %c0_50 = arith.constant 0 : index
    %c0_51 = arith.constant 0 : index
    %71 = vector.load %arg3[%c7_49, %c0_50, %c0_51] : memref<9x4x4xf32, #tpu.memory_space<vmem>>, vector<1x4x4xf32>
    %72 = vector.shape_cast %71 : vector<1x4x4xf32> to vector<4x4xf32>
    %cst_52 = arith.constant dense<0.000000e+00> : vector<4x256xf32>
    %73 = tpu.matmul %72, %70, %cst_52 {dimension_numbers = #tpu.dot_dimension_numbers<[1], [0], [0], [1], [0, 0, 1, 1], [], []>} : vector<4x4xf32>, vector<4x256xf32>, vector<4x256xf32> -> vector<4x256xf32>
    %74 = arith.addf %65, %73 : vector<4x256xf32>
    %c239_i32 = arith.constant 239 : i32
    %75 = tpu.dynamic_rotate %8 by %c239_i32 dim 1 : vector<4x256xf32>, i32 -> vector<4x256xf32>
    %c8 = arith.constant 8 : index
    %c0_53 = arith.constant 0 : index
    %c0_54 = arith.constant 0 : index
    %76 = vector.load %arg6[%c8, %c0_53, %c0_54] : memref<9x1x256xf32, #tpu.memory_space<vmem>>, vector<1x1x256xf32>
    %77 = vector.shape_cast %76 : vector<1x1x256xf32> to vector<1x256xf32>
    %78 = vector.broadcast %77 : vector<1x256xf32> to vector<4x256xf32>
    %79 = arith.mulf %75, %78 : vector<4x256xf32>
    %c8_55 = arith.constant 8 : index
    %c0_56 = arith.constant 0 : index
    %c0_57 = arith.constant 0 : index
    %80 = vector.load %arg3[%c8_55, %c0_56, %c0_57] : memref<9x4x4xf32, #tpu.memory_space<vmem>>, vector<1x4x4xf32>
    %81 = vector.shape_cast %80 : vector<1x4x4xf32> to vector<4x4xf32>
    %cst_58 = arith.constant dense<0.000000e+00> : vector<4x256xf32>
    %82 = tpu.matmul %81, %79, %cst_58 {dimension_numbers = #tpu.dot_dimension_numbers<[1], [0], [0], [1], [0, 0, 1, 1], [], []>} : vector<4x4xf32>, vector<4x256xf32>, vector<4x256xf32> -> vector<4x256xf32>
    %83 = arith.addf %74, %82 : vector<4x256xf32>
    %84 = vector.extract_strided_slice %1 {offsets = [16, 0], sizes = [4, 256], strides = [1, 1]} : vector<36x256xf32> to vector<4x256xf32>
    %c0_59 = arith.constant 0 : index
    %c0_60 = arith.constant 0 : index
    %85 = vector.load %arg5[%c0_59, %c0_60] : memref<4x1xf32, #tpu.memory_space<vmem>>, vector<4x1xf32>
    %86 = vector.broadcast %85 : vector<4x1xf32> to vector<4x256xf32>
    %87 = arith.addf %83, %86 : vector<4x256xf32>
    %88 = arith.addf %87, %84 : vector<4x256xf32>
    %cst_61 = arith.constant 0.000000e+00 : f32
    %89 = vector.broadcast %cst_61 : f32 to vector<4x256xf32>
    %90 = arith.maximumf %88, %89 : vector<4x256xf32>
    %c0_62 = arith.constant 0 : index
    %c0_63 = arith.constant 0 : index
    %c0_64 = arith.constant 0 : index
    %91 = vector.load %arg7[%c0_62, %c0_63, %c0_64] : memref<1x4x256xf32, #tpu.memory_space<vmem>>, vector<1x4x256xf32>
    %92 = vector.shape_cast %91 : vector<1x4x256xf32> to vector<4x256xf32>
    %93 = vector.shape_cast %90 : vector<4x256xf32> to vector<1x4x256xf32>
    tpu.vector_store %arg7[%c0_62, %c0_63, %c0_64], %93 {strides = array<i32>} : memref<1x4x256xf32, #tpu.memory_space<vmem>>, vector<1x4x256xf32>,
    return
  }
  func.func @transform_0(%arg0: i32) -> (i32, i32, i32) {
    %c0_i32 = arith.constant 0 : i32
    %c0_i32_0 = arith.constant 0 : i32
    %c0_i32_1 = arith.constant 0 : i32
    return %arg0, %c0_i32, %c0_i32_0 : i32, i32, i32
  }
  func.func @transform_1(%arg0: i32) -> (i32, i32) {
    %c0_i32 = arith.constant 0 : i32
    %c0_i32_0 = arith.constant 0 : i32
    %c0_i32_1 = arith.constant 0 : i32
    return %c0_i32, %c0_i32_0 : i32, i32
  }
  func.func @transform_2(%arg0: i32) -> (i32, i32, i32) {
    %c0_i32 = arith.constant 0 : i32
    %c0_i32_0 = arith.constant 0 : i32
    %c0_i32_1 = arith.constant 0 : i32
    %c0_i32_2 = arith.constant 0 : i32
    return %c0_i32, %c0_i32_0, %c0_i32_1 : i32, i32, i32
  }
  func.func @transform_3(%arg0: i32) -> (i32, i32) {
    %c0_i32 = arith.constant 0 : i32
    %c0_i32_0 = arith.constant 0 : i32
    %c0_i32_1 = arith.constant 0 : i32
    return %c0_i32, %c0_i32_0 : i32, i32
  }
  func.func @transform_4(%arg0: i32) -> (i32, i32) {
    %c0_i32 = arith.constant 0 : i32
    %c0_i32_0 = arith.constant 0 : i32
    %c0_i32_1 = arith.constant 0 : i32
    return %c0_i32, %c0_i32_0 : i32, i32
  }
  func.func @transform_5(%arg0: i32) -> (i32, i32, i32) {
    %c0_i32 = arith.constant 0 : i32
    %c0_i32_0 = arith.constant 0 : i32
    %c0_i32_1 = arith.constant 0 : i32
    %c0_i32_2 = arith.constant 0 : i32
    return %c0_i32, %c0_i32_0, %c0_i32_1 : i32, i32, i32
  }
  func.func @transform_6(%arg0: i32) -> (i32, i32, i32) {
    %c0_i32 = arith.constant 0 : i32
    %c0_i32_0 = arith.constant 0 : i32
    %c0_i32_1 = arith.constant 0 : i32
    return %arg0, %c0_i32, %c0_i32_0 : i32, i32, i32
  }
}

</mosaic_0001>

<bundles_post_ra>
// kernel: tpu_custom_call.1
= control target key start
LH: loop header
LB: loop body
LE: loop exit
PB: predicated region body
PF: predicated region fallthrough
CT: control target
= control target key end

     0   :  { %11 = vsyncpa [#allocation3], 0  ;;  %s1867_s0 = inlined_call_operand.vmem [shape: f32[2,36,256], index: 0, kind: input, shape index: {}]   ;;  %s1868_s1 = inlined_call_operand.vmem [shape: f32[4,36], index: 1, kind: input, shape index: {}]   ;;  %s1869_s2 = inlined_call_operand.vmem [shape: f32[9,4,4], index: 2, kind: input, shape index: {}]   ;;  %s1870_s3 = inlined_call_operand.vmem [shape: f32[4,1], index: 3, kind: input, shape index: {}]   ;;  %s1871_s4 = inlined_call_operand.vmem [shape: f32[4,1], index: 4, kind: input, shape index: {}]   ;;  %s1872_s5 = inlined_call_operand.vmem [shape: f32[9,1,256], index: 5, kind: input, shape index: {}]   ;;  %s1873_s6 = inlined_call_operand.hbm [shape: f32[2,4,256], index: 6, kind: output, shape index: {}]  }
   0x1   :  { %13 = vsyncpa [#allocation3 + $0x1], 0  ;;  %s1614_s21 = smov 0   ;;  %s1616_s22 = smov 0  }
   0x2   :  { %s1618_s23 = smov 0   ;;  %s1620_s24 = smov 0  }
   0x3 LB: > { %s1635_s25 = sadd.s32 4294967295, %s1566_s24   ;;  %s1371_s26 = sadd.s32 4294967294, %s1566_s24   ;;  %s1566_s24 = sphi %s1620_s24, %s1879_s24   ;;  %s1562_s23 = sphi %s1618_s23, %s1878_s23   ;;  %s1558_s22 = sphi %s1616_s22, %s1877_s22   ;;  %s1554_s21 = sphi %s1614_s21, %s1876_s21  }
   0x4   : > { %s1639_s27 = sadd.s32 1, %s1566_s24   ;;  %s157_s28 = sadd.s32 1, %s1562_s23 }
   0x5   : > { %s154_s29 = ssub.s32 %s1566_s24, %s1639_s27  ;;  %p167_p0 = scmp.ne.s32.totalorder %s1562_s23, %s1558_s22 }
   0x6   : > { %p155_p1 = scmp.eq.s32.totalorder %s154_s29, 0  ;;  %p168_p2 = scmp.eq.s32.totalorder %s1635_s25, 1 }
   0x7   : > { %p173_p3 = scmp.ne.s32.totalorder %s1558_s22, %s1554_s21  ;;  %p174_p4 = scmp.eq.s32.totalorder %s1371_s26, 1 }
   0x8   : > { %s1650_s30 = scalar_select %p155_p1, %s1562_s23, %s157_s28  }
   0x9   : > { %p1652_p5 = por %p168_p2, %p167_p0  ;;  %p1656_p6 = por %p174_p4, %p173_p3 }
   0xa   : > { %p1374_p7 = scmp.ge.s32.totalorder %s1566_s24, 1  ;;  %p215_p8 = scmp.lt.s32.totalorder %s1566_s24, 3 }
   0xc   : > { %p216_p9 = pnand %p1374_p7, %p215_p8 }
   0xd   : > { %p245_p10 = scmp.lt.s32.totalorder (!%p216_p9), %s1635_s25, 1  ;;  %v1568_v0 = vmov (!%p216_p9), 0.0   ;;  %v261_v1 = vld [vmem:[%s1870_s3] sm:$0xf] (!%p216_p9)  ;;  %v1569_v2 = vmov (!%p216_p9), 0   ;;  %vm271_vm0 = vcmask (!%p216_p9), 1043456   ;;  %v355_v26 = vlaneseq (!%p216_p9) }
   0xe   : > { %219 = sbr.rel (%p216_p9) target bundleno = 653 (0x28d), region = 44  ;;  %342 = vmatprep.mubr.f32.mxu0 (!%p216_p9), %v1568_v0  ;;  %763 = vmatprep.mubr.f32.mxu1 (!%p216_p9), %v1568_v0  ;;  %v260_v17 = vld [vmem:[%s1868_s1] sm:$0xf] (!%p216_p9)  ;;  %vm267_vm1 = vcmask (!%p216_p9), 293888   ;;  %s1570_s18 = smov (!%p216_p9), 1   ;;  %vm399_vm4 = vcmask (!%p216_p9), 31744  }
   0xf   : > { %1502 = vset.pattern.permute.xlu0 (!%p216_p9), %v1569_v2  ;;  %1503 = vset.pattern.permute.xlu1 (!%p216_p9), %v1569_v2  ;;  %s1571_s19 = smov (!%p216_p9), 127   ;;  %s1572_s20 = smov (!%p216_p9), 16   ;;  %v1280_v25 = vld [vmem:[%s1871_s4] sm:$0xf] (!%p216_p9)  ;;  %v363_v27 = vshrl.u32 (!%p216_p9), %v355_v26, 7  ;;  %v1687_v28 = vand.u32 (!%p216_p9), 127, %v355_v26 }
  0x10   : > { %264 = vperm.xlu0 (!%p216_p9), %1502, %v261_v1   ;;  %s1573_s26 = smov (!%p216_p9), 113   ;;  %s1574_s28 = smov (!%p216_p9), 17   ;;  %v1393_v31 = vld [vmem:[%s1872_s5 + $0x6] sm:$0x3] (!%p216_p9)  ;;  %v1402_v35 = vld [vmem:[%s1872_s5 + $0xa] sm:$0x3] (!%p216_p9) }
  0x11   : > { %s1575_s29 = smov (!%p216_p9), 112   ;;  %s1576_s9 = smov (!%p216_p9), 15   ;;  %v1689_v29 = vsub.s32 (!%p216_p9), 0, %v363_v27  ;;  %v1691_v30 = vsub.s32 (!%p216_p9), 1, %v363_v27  ;;  %vm670_vm2 = vcmp.lt.s32.totalorder (!%p216_p9), %v1687_v28, 1  ;;  %vm860_vm3 = vcmp.lt.s32.totalorder (!%p216_p9), %v1687_v28, 127 }
  0x12   : > { %s1577_s10 = smov (!%p216_p9), 111   ;;  %v1394_v43 = vld [vmem:[%s1869_s2 + $0xc] sm:$0xf] (!%p216_p9)  ;;  %v1380_v44 = vld [vmem:[%s1872_s5 + $0x2] sm:$0x3] (!%p216_p9)  ;;  %vm379_vm5 = vcmp.lt.s32.totalorder (!%p216_p9), %v1687_v28, 16 }
  0x13   : > { %v679_v32 = vrot.slane (!%p216_p9), %v1393_v31, %v1689_v29  ;;  %v683_v33 = vrot.slane (!%p216_p9), %v1393_v31, %v1691_v30  ;;  %v873_v40 = vrot.slane (!%p216_p9), %v1402_v35, %v1691_v30  ;;  %v388_v48 = vrot.slane (!%p216_p9), %v1380_v44, %v1689_v29  ;;  %v1407_v51 = vld [vmem:[%s1872_s5 + $0xc] sm:$0x3] (!%p216_p9)  ;;  %v1381_v61 = vld [vmem:[%s1869_s2 + $0x4] sm:$0xf] (!%p216_p9)  ;;  %v1398_v62 = vld [vmem:[%s1869_s2 + $0x10] sm:$0xf] (!%p216_p9) }
  0x14   : > { %v392_v49 = vrot.slane (!%p216_p9), %v1380_v44, %v1691_v30  ;;  %v869_v53 = vrot.slane (!%p216_p9), %v1402_v35, %v1689_v29  ;;  %vm966_vm6 = vcmp.lt.s32.totalorder (!%p216_p9), %v1687_v28, 113  ;;  %v979_v59 = vrot.slane (!%p216_p9), %v1407_v51, %v1691_v30  ;;  %v360_v63 = vld [vmem:[%s1872_s5] sm:$0x3] (!%p216_p9)  ;;  %v1408_v44 = vld [vmem:[%s1869_s2 + $0x18] sm:$0xf] (!%p216_p9)  ;;  %s242_s17 = sand.u32 (!%p216_p9), 1, %s1558_s22  }
  0x15   : > { %s246_s11 = scalar_select %p245_p10, %s1635_s25, 1  ;;  %vm357_vm7 = vcmp.lt.s32.totalorder %v1687_v28, 17  ;;  %vm1072_vm8 = vcmp.lt.s32.totalorder %v1687_v28, 112  ;;  %vm564_vm9 = vcmp.lt.s32.totalorder %v1687_v28, 15  ;;  %vm1178_vm10 = vcmp.lt.s32.totalorder %v1687_v28, 111 }
  0x17   : > { %s1452_s12 = smul.u32 80, %s246_s11 }
  0x19   : > { %s249_s15 = scalar_lea.vmem %s1867_s0, %s1452_s12 }
  0x1a   : > { %v251_v3 = vld [vmem:[%s249_s15 + $0x8] sm:$0xff]  ;;  %v253_v4 = vld [vmem:[%s249_s15 + $0x18] sm:$0xff]  ;;  %v250_v5 = vld [vmem:[%s249_s15] sm:$0xff] }
  0x1b   : > { %v1428_v6 = vpack.c.bf16 %v253_v4, %v251_v3  ;;  %v252_v7 = vld [vmem:[%s249_s15 + $0x10] sm:$0xff]  ;;  %v1672_v8 = vld [vmem:[%s249_s15 + $0x28] sm:$0xff]  ;;  %v257_v9 = vld [vmem:[%s249_s15 + $0x38] sm:$0xff] }
  0x1c   : > { %v1430_v10 = vpack.c.bf16 %v252_v7, %v250_v5  ;;  %v1432_v11 = vpack.c.bf16 %v257_v9, %v1672_v8  ;;  %v1675_v12 = vld [vmem:[%s249_s15 + $0x20] sm:$0xff]  ;;  %v256_v13 = vld [vmem:[%s249_s15 + $0x30] sm:$0xff]  ;;  %v259_v15 = vld [vmem:[%s249_s15 + $0x48] sm:$0xf]  ;;  %v365_v5 = vrot.slane %v360_v63, %v1689_v29 }
  0x1d   : > { %1429 = vmatprep.subr.bf16.mxu0 %v1428_v6  ;;  %v1434_v14 = vpack.c.bf16 %v256_v13, %v1675_v12  ;;  %v258_v16 = vld [vmem:[%s249_s15 + $0x40] sm:$0xf]  ;;  %v369_v6 = vrot.slane %v360_v63, %v1691_v30  ;;  %v1412_v9 = vld [vmem:[%s1872_s5 + $0xe] sm:$0x3] }
  0x1e   : > { %1431 = vmatpush1.bf16.msra.mxu0 %v1430_v10  ;;  %v1081_v35 = vrot.slane %v1412_v9, %v1689_v29 }
  0x1f   : > { %1433 = vmatprep.subr.bf16.mxu0 %v1432_v11  ;;  %v975_v11 = vrot.slane %v1407_v51, %v1689_v29 }
  0x22   : > { %1435 = vmatpush1.bf16.msra.mxu0 %v1434_v14 }
  0x23   : > { %1377 = vmatprep.subr.msk.mxu0 %vm271_vm0, %v259_v15 }
  0x26   : > { %1378 = vmatpush1.msk.msra.mxu0 %vm271_vm0, %v258_v16 }
  0x27   : > { %1379 = vmatmul.mubr.msk.f32.vlgmr.msra.gmra.mrb[0].mxu0 %vm267_vm1, %v260_v17 }
  0x28   : > { %473 = vmatprep.mubr.f32.mxu0 %v1568_v0 }
  0x8f   : > { %v265_v18 = vpop.permute.xlu0 %264 }
  0xfa   : > { %v344_v19 = vpop.f32.mrb[0].mxu0 }
  0xfb   : > { %v345_v20 = vadd.f32 %v344_v19, %v265_v18  ;;  %v346_v21 = vpop.f32.mrb[1].mxu0 }
  0xfc   : > { %v347_v22 = vadd.f32 %v346_v21, %v265_v18  ;;  %v1085_v18 = vrot.slane %v1412_v9, %v1691_v30  ;;  %v1403_v21 = vld [vmem:[%s1869_s2 + $0x14] sm:$0xf] }
  0xfd   : > { %v349_v23 = vmax.f32 %v345_v20, 0.0  ;;  %v374_v20 = vld [vmem:[%s1869_s2] sm:$0xf] }
  0xfe   : > { %v350_v24 = vmax.f32 %v347_v22, 0.0  ;;  %v1388_v22 = vld [vmem:[%s1872_s5 + $0x4] sm:$0x3] }
  0xff   : > { %666 = vrot.lane.b32.xlu0 %v349_v23, %s1570_s18  ;;  %v573_v27 = vrot.slane %v1388_v22, %v1689_v29  ;;  %v577_v31 = vrot.slane %v1388_v22, %v1691_v30 }
 0x100   : > { %668 = vrot.lane.b32.xlu1 %v350_v24, %s1570_s18  ;;  %s1375_s18 = sshll.u32 %s242_s17, 3 }
 0x103   : > { %858 = vrot.lane.b32.xlu0 %v350_v24, %s1571_s19 }
 0x104   : > { %856 = vrot.lane.b32.xlu1 %v349_v23, %s1571_s19  ;;  %s1427_s19 = sshll.u32 %s1635_s25, 7  ;;  %s1578_s25 = smov [#allocation2]  }
 0x105   : > { %s1508_s12 = sshll.u32 %s1578_s25, 4  ;;  %s1509_s12 = int_to_ptr.vmem [resolvable:$false] %s1508_s12 }
 0x106   : > { %s1510_s13 = scalar_lea.vmem %s1509_s12, 256 }
 0x107   : > { %377 = vrot.lane.b32.xlu0 %v350_v24, %s1572_s20 }
 0x108   : > { %375 = vrot.lane.b32.xlu1 %v349_v23, %s1572_s20  ;;  %s244_s20 = scalar_lea.vmem [#allocation2], %s1375_s18 }
 0x10b   : > { %964 = vrot.lane.b32.xlu0 %v350_v24, %s1573_s26 }
 0x10c   : > { %962 = vrot.lane.b32.xlu1 %v349_v23, %s1573_s26  ;;  %s1312_s26 = sshll.u32 %s244_s20, 4  ;;  %s1827_s26 = int_to_ptr.vmem [resolvable:$true] %s1312_s26 }
 0x10d   : > { %s1504_s11 = scalar_lea.vmem %s1827_s26, 128  ;;  %p1511_p0 = scmp.lt.s32.totalorder %s1827_s26, %s1509_s12 }
 0x10e   : > { %p1505_p11 = scmp.ne.s32.totalorder %s1827_s26, %s1504_s11  ;;  %p1512_p1 = scmp.lt.s32.totalorder %s1510_s13, %s1504_s11 }
 0x10f   : > { %353 = vrot.lane.b32.xlu0 %v350_v24, %s1574_s28 }
 0x110   : > { %351 = vrot.lane.b32.xlu1 %v349_v23, %s1574_s28  ;;  %p1506_p12 = pnand %p1505_p11, %p1652_p5  ;;  %p1513_p2 = por %p1512_p1, %p1511_p0 }
 0x112   : > { %p1507_p13 = pneg %p1506_p12 }
 0x113   : > { %1070 = vrot.lane.b32.xlu0 %v350_v24, %s1575_s29 }
 0x114   : > { %1068 = vrot.lane.b32.xlu1 %v349_v23, %s1575_s29  ;;  %p1514_p3 = pnand %p1513_p2, %p1507_p13 }
 0x117   : > { %562 = vrot.lane.b32.xlu0 %v350_v24, %s1576_s9 }
 0x118   : > { %560 = vrot.lane.b32.xlu1 %v349_v23, %s1576_s9  ;;  %s1825_s9 = scalar_lea.hbm %s1873_s6, %s1427_s19 }
 0x11b   : > { %1176 = vrot.lane.b32.xlu0 %v350_v24, %s1577_s10 }
 0x11c   : > { %1174 = vrot.lane.b32.xlu1 %v349_v23, %s1577_s10  ;;  %s1298_s10 = scalar_lea.sflag [#allocation3], %s242_s17 }
 0x120   : > { %1283 = vperm.xlu1 %1503, %v1280_v25  }
 0x171   : > { %v667_v34 = vpop.permute.xlu0 %666 }
 0x172   : > { %v669_v36 = vpop.permute.xlu1 %668 }
 0x173   : > { %v671_v37 = vsel %vm670_vm2, %v667_v34, %v669_v36  ;;  %v672_v38 = vsel %vm670_vm2, %v669_v36, %v667_v34 }
 0x174   : > { %v686_v39 = vmul.f32 %v679_v32, %v672_v38  ;;  %v687_v41 = vmul.f32 %v683_v33, %v671_v37  ;;  %v1417_v33 = vld [vmem:[%s1872_s5 + $0x10] sm:$0x3] }
 0x175   : > { %v859_v42 = vpop.permute.xlu0 %858 }
 0x176   : > { %v857_v45 = vpop.permute.xlu1 %856  ;;  %1395 = vmatprep.subr.msk.mxu1 %vm271_vm0, %v687_v41  ;;  %v1191_v41 = vrot.slane %v1417_v33, %v1691_v30  ;;  %v1187_v30 = vrot.slane %v1417_v33, %v1689_v29 }
 0x177   : > { %v862_v46 = vsel %vm860_vm3, %v859_v42, %v857_v45  ;;  %1396 = vmatpush1.msk.msra.mxu1 %vm271_vm0, %v686_v39  ;;  %v861_v56 = vsel %vm860_vm3, %v857_v45, %v859_v42 }
 0x178   : > { %v877_v47 = vmul.f32 %v873_v40, %v862_v46  ;;  %1397 = vmatmul.mubr.msk.f32.vlgmr.msra.gmra.mrb[0].mxu1 %vm399_vm4, %v1394_v43  ;;  %1399 = vmatprep.subr.msk.mxu1 %vm271_vm0, %v350_v24  ;;  %v876_v2 = vmul.f32 %v869_v53, %v861_v56  ;;  %v1389_v43 = vld [vmem:[%s1869_s2 + $0x8] sm:$0xf] }
 0x179   : > { %1400 = vmatpush1.msk.msra.mxu1 %vm271_vm0, %v349_v23  ;;  %v378_v50 = vpop.permute.xlu0 %377  ;;  %847 = vmatprep.mubr.f32.mxu1 %v1568_v0 }
 0x17a   : > { %v376_v52 = vpop.permute.xlu1 %375  ;;  %1404 = vmatprep.subr.msk.mxu1 %vm271_vm0, %v877_v47 }
 0x17b   : > { %v380_v54 = vsel %vm379_vm5, %v376_v52, %v378_v50  ;;  %v381_v55 = vsel %vm379_vm5, %v378_v50, %v376_v52  ;;  %v1413_v50 = vld [vmem:[%s1869_s2 + $0x1c] sm:$0xf]  ;;  %v1418_v52 = vld [vmem:[%s1869_s2 + $0x20] sm:$0xf] }
 0x17c   : > { %v395_v57 = vmul.f32 %v388_v48, %v381_v55  ;;  %v396_v58 = vmul.f32 %v392_v49, %v380_v54 }
 0x17d   : > { %v965_v60 = vpop.permute.xlu0 %964 }
 0x17e   : > { %v963_v1 = vpop.permute.xlu1 %962  ;;  %1382 = vmatprep.subr.msk.mxu0 %vm271_vm0, %v396_v58 }
 0x17f   : > { %v968_v3 = vsel %vm966_vm6, %v965_v60, %v963_v1  ;;  %1383 = vmatpush1.msk.msra.mxu0 %vm271_vm0, %v395_v57  ;;  %v967_v15 = vsel %vm966_vm6, %v963_v1, %v965_v60 }
 0x180   : > { %v983_v4 = vmul.f32 %v979_v59, %v968_v3  ;;  %1384 = vmatmul.mubr.msk.f32.vlgmr.msra.gmra.mrb[2].mxu0 %vm399_vm4, %v1381_v61  ;;  %1401 = vmatmul.mubr.msk.f32.vlgmr.msra.gmra.mrb[0].mxu1 %vm399_vm4, %v1398_v62  ;;  %v982_v24 = vmul.f32 %v975_v11, %v967_v15 }
 0x181   : > { %1405 = vmatpush1.msk.msra.mxu1 %vm271_vm0, %v876_v2  ;;  %v354_v7 = vpop.permute.xlu0 %353  ;;  %553 = vmatprep.mubr.f32.mxu0 %v1568_v0 }
 0x182   : > { %v352_v10 = vpop.permute.xlu1 %351  ;;  %1409 = vmatprep.subr.msk.mxu1 %vm271_vm0, %v983_v4  ;;  %953 = vmatprep.mubr.f32.mxu1 %v1568_v0 }
 0x183   : > { %v358_v13 = vsel %vm357_vm7, %v352_v10, %v354_v7  ;;  %v359_v14 = vsel %vm357_vm7, %v354_v7, %v352_v10 }
 0x184   : > { %v372_v16 = vmul.f32 %v365_v5, %v359_v14  ;;  %v373_v17 = vmul.f32 %v369_v6, %v358_v13 }
 0x185   : > { %v1071_v19 = vpop.permute.xlu0 %1070 }
 0x186   : > { %v1069_v23 = vpop.permute.xlu1 %1068  ;;  %1385 = vmatprep.subr.msk.mxu0 %vm271_vm0, %v373_v17 }
 0x187   : > { %v1074_v25 = vsel %vm1072_vm8, %v1071_v19, %v1069_v23  ;;  %1386 = vmatpush1.msk.msra.mxu0 %vm271_vm0, %v372_v16  ;;  %v1073_v38 = vsel %vm1072_vm8, %v1069_v23, %v1071_v19 }
 0x188   : > { %v1089_v26 = vmul.f32 %v1085_v18, %v1074_v25  ;;  %1387 = vmatmul.mubr.msk.f32.vlgmr.msra.gmra.mrb[2].mxu0 %vm399_vm4, %v374_v20  ;;  %1406 = vmatmul.mubr.msk.f32.vlgmr.msra.gmra.mrb[0].mxu1 %vm399_vm4, %v1403_v21  ;;  %v1088_v46 = vmul.f32 %v1081_v35, %v1073_v38 }
 0x189   : > { %1410 = vmatpush1.msk.msra.mxu1 %vm271_vm0, %v982_v24  ;;  %v563_v32 = vpop.permute.xlu0 %562  ;;  %657 = vmatprep.mubr.f32.mxu0 %v1568_v0 }
 0x18a   : > { %v561_v34 = vpop.permute.xlu1 %560  ;;  %1414 = vmatprep.subr.msk.mxu1 %vm271_vm0, %v1089_v26  ;;  %1059 = vmatprep.mubr.f32.mxu1 %v1568_v0 }
 0x18b   : > { %v565_v36 = vsel %vm564_vm9, %v561_v34, %v563_v32  ;;  %v566_v37 = vsel %vm564_vm9, %v563_v32, %v561_v34 }
 0x18c   : > { %v580_v39 = vmul.f32 %v573_v27, %v566_v37  ;;  %v581_v40 = vmul.f32 %v577_v31, %v565_v36 }
 0x18d   : > { %v1177_v42 = vpop.permute.xlu0 %1176 }
 0x18e   : > { %v1175_v45 = vpop.permute.xlu1 %1174  ;;  %1390 = vmatprep.subr.msk.mxu0 %vm271_vm0, %v581_v40 }
 0x18f   : > { %v1180_v47 = vsel %vm1178_vm10, %v1177_v42, %v1175_v45  ;;  %1391 = vmatpush1.msk.msra.mxu0 %vm271_vm0, %v580_v39  ;;  %v1179_v49 = vsel %vm1178_vm10, %v1175_v45, %v1177_v42 }
 0x190   : > { %v1195_v48 = vmul.f32 %v1191_v41, %v1180_v47  ;;  %1392 = vmatmul.mubr.msk.f32.vlgmr.msra.gmra.mrb[2].mxu0 %vm399_vm4, %v1389_v43  ;;  %1411 = vmatmul.mubr.msk.f32.vlgmr.msra.gmra.mrb[0].mxu1 %vm399_vm4, %v1408_v44  ;;  %v1194_v51 = vmul.f32 %v1187_v30, %v1179_v49 }
 0x191   : > { %1415 = vmatpush1.msk.msra.mxu1 %vm271_vm0, %v1088_v46  ;;  %1165 = vmatprep.mubr.f32.mxu1 %v1568_v0 }
 0x192   : > { %1419 = vmatprep.subr.msk.mxu1 %vm271_vm0, %v1195_v48 }
 0x198   : > { %1416 = vmatmul.mubr.msk.f32.vlgmr.msra.gmra.mrb[0].mxu1 %vm399_vm4, %v1413_v50 }
 0x199   : > { %1420 = vmatpush1.msk.msra.mxu1 %vm271_vm0, %v1194_v51  ;;  %1271 = vmatprep.mubr.f32.mxu1 %v1568_v0 }
 0x19f   : > { %v1284_v54 = vpop.permute.xlu1 %1283 }
 0x1a0   : > { %1421 = vmatmul.mubr.msk.f32.vlgmr.msra.gmra.mrb[0].mxu1 %vm399_vm4, %v1418_v52 }
 0x263   : > { %v659_v28 = vpop.f32.mrb[2].mxu0 }
 0x264   : > { %v661_v29 = vpop.f32.mrb[3].mxu0 }
 0x273   : > { %v1273_v53 = vpop.f32.mrb[0].mxu1 }
 0x274   : > { %v1436_v55 = vadd.f32 %v1273_v53, %v659_v28  ;;  %v1275_v56 = vpop.f32.mrb[1].mxu1 }
 0x275   : > { %v1437_v57 = vadd.f32 %v1275_v56, %v661_v29 }
 0x276   : > { %v1286_v58 = vadd.f32 %v1436_v55, %v1284_v54 }
 0x277   : > { %v1287_v59 = vadd.f32 %v1437_v57, %v1284_v54 }
 0x278   : > { %v1288_v0 = vadd.f32 %v1286_v58, %v1675_v12 }
 0x279   : > { %v1289_v60 = vadd.f32 %v1287_v59, %v1672_v8 }
 0x27a   : > { %v1290_v61 = vmax.f32 %v1288_v0, 0.0 }
 0x27b   : > { %v1291_v62 = vmax.f32 %v1289_v60, 0.0 }
 0x27d   : > { %v1294_v63 = vcombine.low %v1290_v61, %v1291_v62 }
 0x27f   : > { %1296 = vst [vmem:[%s244_s20] sm:$0xff] %v1294_v63 }
 0x280   : > { %1517 = shalt.err (!%p1514_p3)
}
 0x281   : > { %s1518_s14 = scalar_lea.hbm %s1825_s9, 128  ;;  %s1522_s17 = scalar_lea.hbm %s1873_s6, 256 }
 0x282   : > { %p1519_p4 = scmp.ne.s32.totalorder %s1825_s9, %s1518_s14  ;;  %p1523_p9 = scmp.lt.u32.totalorder %s1825_s9, %s1873_s6 }
 0x283   : > { %p1524_p10 = scmp.lt.u32.totalorder %s1522_s17, %s1518_s14  ;;  %p1526_p12 = scmp.lt.u32.totalorder %s1518_s14, %s1825_s9 }
 0x284   : > { %p1520_p7 = pnand %p1519_p4, %p1652_p5 }
 0x285   : > { %p1525_p11 = por %p1524_p10, %p1523_p9 }
 0x286   : > { %p1521_p8 = pneg %p1520_p7 }
 0x287   : > { %p1527_p13 = por %p1526_p12, %p1525_p11 }
 0x289   : > { %p1528_p0 = pnand %p1527_p13, %p1521_p8 }
 0x28b   : > { %1531 = shalt.err (!%p1528_p0)
}
 0x28c   : > { %1453 = dma.vmem_to_hbm [thread:$0]  (%p1652_p5), %s1827_s26, 128, %s1825_s9, %s1298_s10  }
 0x28d PF: > { %p1459_p1 = scmp.ge.s32.totalorder %s1566_s24, 2  ;;  %s1324_s20 = sand.u32 1, %s1554_s21  }
 0x28e   : > { %s1325_s28 = scalar_lea.sflag [#allocation3], %s1324_s20 }
 0x28f   : > { %p1456_p2 = pnand %p1459_p1, %p1656_p6 }
 0x291   : > { %1549 = dma.done.wait (!%p1456_p2), %s1325_s28, 128  }
 0x292   : > { %1551 = vsyncadd (!%p1456_p2), %s1325_s28, 4294967168  ;;  %p16_p3 = scmp.ge.s32.totalorder %s1639_s27, 4   ;;  %s1876_s21 = smov %s1558_s22 }
 0x293   : > { %s1877_s22 = smov %s1562_s23  ;;  %s1878_s23 = smov %s1650_s30 }
 0x294   : > { %s1879_s24 = smov %s1639_s27  ;;  %18 = sbr.rel (!%p16_p3) target bundleno = 3 (0x3), region = 94 }
 0x29b   :  { %1330 = vsyncpa [#allocation3], 1 }
 0x29c   :  { %1332 = vsyncpa [#allocation3 + $0x1], 1 }

</bundles_post_ra>
